<compile_context>
chip_gen: v5e
topology: v5e:2x2
jax: 0.10.0
libtpu: 0.0.40
codegen_flags: <defaults>
</compile_context>

<pallas_src>
import functools

import jax
import jax.numpy as jnp
from jax.experimental import pallas as pl
from jax.experimental.pallas import tpu as pltpu


SUBLANE = 8                  # f32 sublane tiling (second-to-last dim)
_MEGACORE_SPLIT_ROWS = 2048  # split a single big batch tile in two for v7x's 2 TCs


def _round_up(x, m):
    return ((x + m - 1) // m) * m


def _pick_batch_tile(batch, block_b):
    """Pick a sublane-aligned batch tile; full-dim block for small batches."""
    block_b = max(SUBLANE, _round_up(block_b, SUBLANE))
    if batch > block_b:
        return block_b                              # multi-step grid (ragged tail masked)
    if batch >= _MEGACORE_SPLIT_ROWS:
        # Big single tile: split into two grid steps so v7x can shard across both TCs.
        return _round_up(pl.cdiv(batch, 2), SUBLANE)
    return batch                                    # one full-dim block (always layout-legal)


def policy_kernel(x_ref, w1_ref, b1_ref, wa_ref, ba_ref, wf_ref, bf_ref,
                  attn_ref, ffn_ref):
    # fc1 + ReLU (MXU matmul, f32 accumulation)
    h = jnp.dot(x_ref[...], w1_ref[...], preferred_element_type=jnp.float32)
    h = jnp.maximum(h + b1_ref[...], 0.0)
    # Two small head projections, stored as narrow (A- / F-wide) outputs.
    attn_ref[...] = (jnp.dot(h, wa_ref[...], preferred_element_type=jnp.float32)
                     + ba_ref[...]).astype(attn_ref.dtype)
    ffn_ref[...] = (jnp.dot(h, wf_ref[...], preferred_element_type=jnp.float32)
                    + bf_ref[...]).astype(ffn_ref.dtype)


@functools.partial(jax.jit, static_argnames=("block_b",))
def policy_network_forward(state, params, block_b=4096):
    """state: [B, input_dim] f32.
    params: (w1 [D,H], b1 [1,H], wa [H,A], ba [1,A], wf [H,F], bf [1,F]).
    Returns (attn_logits [B, A], ffn_logits [B, F])."""
    w1, b1, wa, ba, wf, bf = params
    B, D = state.shape
    H = w1.shape[1]
    A = wa.shape[1]
    F = wf.shape[1]

    tb = _pick_batch_tile(B, block_b)
    grid = (pl.cdiv(B, tb),)

    attn, ffn = pl.pallas_call(
        policy_kernel,
        out_shape=(jax.ShapeDtypeStruct((B, A), jnp.float32),
                   jax.ShapeDtypeStruct((B, F), jnp.float32)),
        grid_spec=pltpu.PrefetchScalarGridSpec(
            num_scalar_prefetch=0,
            grid=grid,
            in_specs=[
                pl.BlockSpec((tb, D), lambda i: (i, 0)),   # batch-tiled activations
                # Weight/bias block indices are constant across the grid -> fetched
                # once and VMEM-resident. (~10 KB total; the default double-buffer
                # copy is negligible, so pipeline_mode=pl.Buffered(1) is skipped.)
                pl.BlockSpec((D, H), lambda i: (0, 0)),
                pl.BlockSpec((1, H), lambda i: (0, 0)),
                pl.BlockSpec((H, A), lambda i: (0, 0)),
                pl.BlockSpec((1, A), lambda i: (0, 0)),
                pl.BlockSpec((H, F), lambda i: (0, 0)),
                pl.BlockSpec((1, F), lambda i: (0, 0)),
            ],
            out_specs=[
                pl.BlockSpec((tb, A), lambda i: (i, 0)),
                pl.BlockSpec((tb, F), lambda i: (i, 0)),
            ],
        ),
        compiler_params=pltpu.CompilerParams(
            # Batch axis is independent -> shardable across v7x's two TensorCores.
            # TODO(synk): on v7x, benchmark pltpu.CORE_PARALLEL here and confirm in
            # xprof that both TCs are busy; "parallel" is kept since it is valid on
            # every generation (v5e/v6e have a single TC).
            dimension_semantics=("parallel",),
            vmem_limit_bytes=48 * 1024 * 1024,
        ),
    )(state, w1, b1, wa, ba, wf, bf)
    return attn, ffn


def init_params(key, input_dim, hidden_dim, num_attn_choices, num_ffn_choices):
    """PyTorch nn.Linear-style init (uniform +/- 1/sqrt(fan_in)); weights stored [in, out]."""
    ks = jax.random.split(key, 6)

    def lin(kw, kb, fan_in, fan_out):
        bound = 1.0 / jnp.sqrt(fan_in)
        w = jax.random.uniform(kw, (fan_in, fan_out), jnp.float32, -bound, bound)
        b = jax.random.uniform(kb, (1, fan_out), jnp.float32, -bound, bound)
        return w, b

    w1, b1 = lin(ks[0], ks[1], input_dim, hidden_dim)
    wa, ba = lin(ks[2], ks[3], hidden_dim, num_attn_choices)
    wf, bf = lin(ks[4], ks[5], hidden_dim, num_ffn_choices)
    return (w1, b1, wa, ba, wf, bf)


if __name__ == "__main__":
    # Small shapes consistent with the module's forward pass.
    batch = 2
    input_dim = 16
    hidden_dim = 32
    num_attn_choices = 4
    num_ffn_choices = 3

    key = jax.random.PRNGKey(0)
    k_state, k_params = jax.random.split(key)

    state = jax.random.normal(k_state, (batch, input_dim), jnp.float32)
    params = init_params(k_params, input_dim, hidden_dim,
                         num_attn_choices, num_ffn_choices)

    attn_logits, ffn_logits = jax.block_until_ready(
        policy_network_forward(state, params))

    # Cross-check against a plain-JAX reference of the same forward math.
    w1, b1, wa, ba, wf, bf = params
    h_ref = jnp.maximum(state @ w1 + b1, 0.0)
    attn_ref = h_ref @ wa + ba
    ffn_ref = h_ref @ wf + bf

    assert attn_logits.shape == (batch, num_attn_choices)
    assert ffn_logits.shape == (batch, num_ffn_choices)
    assert jnp.allclose(attn_logits, attn_ref, atol=1e-5)
    assert jnp.allclose(ffn_logits, ffn_ref, atol=1e-5)

    print("KERNEL_OK")
</pallas_src>

<mosaic_0001>
module attributes {stable_mosaic.version = 11 : i64} {
  func.func @policy_kernel(%arg0: i32, %arg1: memref<2x16xf32, #tpu.memory_space<vmem>>, %arg2: memref<16x32xf32, #tpu.memory_space<vmem>>, %arg3: memref<1x32xf32, #tpu.memory_space<vmem>>, %arg4: memref<32x4xf32, #tpu.memory_space<vmem>>, %arg5: memref<1x4xf32, #tpu.memory_space<vmem>>, %arg6: memref<32x3xf32, #tpu.memory_space<vmem>>, %arg7: memref<1x3xf32, #tpu.memory_space<vmem>>, %arg8: memref<2x4xf32, #tpu.memory_space<vmem>>, %arg9: memref<2x3xf32, #tpu.memory_space<vmem>>) attributes {dimension_semantics = [#tpu.dimension_semantics<parallel>], iteration_bounds = array<i64: 1>, scalar_prefetch = 0 : i64, scratch_operands = 0 : i64, tpu.core_type = #tpu.core_type<tc>, window_params = [{transform_indices = @transform_0, window_bounds = array<i64: 2, 16>}, {pipeline_mode = #tpu.pipeline_mode<synchronous>, transform_indices = @transform_1, window_bounds = array<i64: 16, 32>}, {pipeline_mode = #tpu.pipeline_mode<synchronous>, transform_indices = @transform_2, window_bounds = array<i64: 1, 32>}, {pipeline_mode = #tpu.pipeline_mode<synchronous>, transform_indices = @transform_3, window_bounds = array<i64: 32, 4>}, {pipeline_mode = #tpu.pipeline_mode<synchronous>, transform_indices = @transform_4, window_bounds = array<i64: 1, 4>}, {pipeline_mode = #tpu.pipeline_mode<synchronous>, transform_indices = @transform_5, window_bounds = array<i64: 32, 3>}, {pipeline_mode = #tpu.pipeline_mode<synchronous>, transform_indices = @transform_6, window_bounds = array<i64: 1, 3>}, {transform_indices = @transform_7, window_bounds = array<i64: 2, 4>}, {transform_indices = @transform_8, window_bounds = array<i64: 2, 3>}]} {
    %c0 = arith.constant 0 : index
    %c0_0 = arith.constant 0 : index
    %0 = vector.load %arg1[%c0, %c0_0] : memref<2x16xf32, #tpu.memory_space<vmem>>, vector<2x16xf32>
    %c0_1 = arith.constant 0 : index
    %c0_2 = arith.constant 0 : index
    %1 = vector.load %arg2[%c0_1, %c0_2] : memref<16x32xf32, #tpu.memory_space<vmem>>, vector<16x32xf32>
    %cst = arith.constant dense<0.000000e+00> : vector<2x32xf32>
    %2 = tpu.matmul %0, %1, %cst {dimension_numbers = #tpu.dot_dimension_numbers<[1], [0], [0], [1], [0, 0, 1, 1], [], []>} : vector<2x16xf32>, vector<16x32xf32>, vector<2x32xf32> -> vector<2x32xf32>
    %c0_3 = arith.constant 0 : index
    %c0_4 = arith.constant 0 : index
    %3 = vector.load %arg3[%c0_3, %c0_4] : memref<1x32xf32, #tpu.memory_space<vmem>>, vector<1x32xf32>
    %4 = vector.broadcast %3 : vector<1x32xf32> to vector<2x32xf32>
    %5 = arith.addf %2, %4 : vector<2x32xf32>
    %cst_5 = arith.constant 0.000000e+00 : f32
    %6 = vector.broadcast %cst_5 : f32 to vector<2x32xf32>
    %7 = arith.maximumf %5, %6 : vector<2x32xf32>
    %c0_6 = arith.constant 0 : index
    %c0_7 = arith.constant 0 : index
    %8 = vector.load %arg4[%c0_6, %c0_7] : memref<32x4xf32, #tpu.memory_space<vmem>>, vector<32x4xf32>
    %cst_8 = arith.constant dense<0.000000e+00> : vector<2x4xf32>
    %9 = tpu.matmul %7, %8, %cst_8 {dimension_numbers = #tpu.dot_dimension_numbers<[1], [0], [0], [1], [0, 0, 1, 1], [], []>} : vector<2x32xf32>, vector<32x4xf32>, vector<2x4xf32> -> vector<2x4xf32>
    %c0_9 = arith.constant 0 : index
    %c0_10 = arith.constant 0 : index
    %10 = vector.load %arg5[%c0_9, %c0_10] : memref<1x4xf32, #tpu.memory_space<vmem>>, vector<1x4xf32>
    %11 = vector.broadcast %10 : vector<1x4xf32> to vector<2x4xf32>
    %12 = arith.addf %9, %11 : vector<2x4xf32>
    %c0_11 = arith.constant 0 : index
    %c0_12 = arith.constant 0 : index
    %13 = vector.load %arg8[%c0_11, %c0_12] : memref<2x4xf32, #tpu.memory_space<vmem>>, vector<2x4xf32>
    tpu.vector_store %arg8[%c0_11, %c0_12], %12 {strides = array<i32>} : memref<2x4xf32, #tpu.memory_space<vmem>>, vector<2x4xf32>,
    %c0_13 = arith.constant 0 : index
    %c0_14 = arith.constant 0 : index
    %14 = vector.load %arg6[%c0_13, %c0_14] : memref<32x3xf32, #tpu.memory_space<vmem>>, vector<32x3xf32>
    %cst_15 = arith.constant dense<0.000000e+00> : vector<2x3xf32>
    %15 = tpu.matmul %7, %14, %cst_15 {dimension_numbers = #tpu.dot_dimension_numbers<[1], [0], [0], [1], [0, 0, 1, 1], [], []>} : vector<2x32xf32>, vector<32x3xf32>, vector<2x3xf32> -> vector<2x3xf32>
    %c0_16 = arith.constant 0 : index
    %c0_17 = arith.constant 0 : index
    %16 = vector.load %arg7[%c0_16, %c0_17] : memref<1x3xf32, #tpu.memory_space<vmem>>, vector<1x3xf32>
    %17 = vector.broadcast %16 : vector<1x3xf32> to vector<2x3xf32>
    %18 = arith.addf %15, %17 : vector<2x3xf32>
    %c0_18 = arith.constant 0 : index
    %c0_19 = arith.constant 0 : index
    %19 = vector.load %arg9[%c0_18, %c0_19] : memref<2x3xf32, #tpu.memory_space<vmem>>, vector<2x3xf32>
    tpu.vector_store %arg9[%c0_18, %c0_19], %18 {strides = array<i32>} : memref<2x3xf32, #tpu.memory_space<vmem>>, vector<2x3xf32>,
    return
  }
  func.func @transform_0(%arg0: i32) -> (i32, i32) {
    %c0_i32 = arith.constant 0 : i32
    %c0_i32_0 = arith.constant 0 : i32
    return %arg0, %c0_i32 : i32, i32
  }
  func.func @transform_1(%arg0: i32) -> (i32, i32) {
    %c0_i32 = arith.constant 0 : i32
    %c0_i32_0 = arith.constant 0 : i32
    %c0_i32_1 = arith.constant 0 : i32
    return %c0_i32, %c0_i32_0 : i32, i32
  }
  func.func @transform_2(%arg0: i32) -> (i32, i32) {
    %c0_i32 = arith.constant 0 : i32
    %c0_i32_0 = arith.constant 0 : i32
    %c0_i32_1 = arith.constant 0 : i32
    return %c0_i32, %c0_i32_0 : i32, i32
  }
  func.func @transform_3(%arg0: i32) -> (i32, i32) {
    %c0_i32 = arith.constant 0 : i32
    %c0_i32_0 = arith.constant 0 : i32
    %c0_i32_1 = arith.constant 0 : i32
    return %c0_i32, %c0_i32_0 : i32, i32
  }
  func.func @transform_4(%arg0: i32) -> (i32, i32) {
    %c0_i32 = arith.constant 0 : i32
    %c0_i32_0 = arith.constant 0 : i32
    %c0_i32_1 = arith.constant 0 : i32
    return %c0_i32, %c0_i32_0 : i32, i32
  }
  func.func @transform_5(%arg0: i32) -> (i32, i32) {
    %c0_i32 = arith.constant 0 : i32
    %c0_i32_0 = arith.constant 0 : i32
    %c0_i32_1 = arith.constant 0 : i32
    return %c0_i32, %c0_i32_0 : i32, i32
  }
  func.func @transform_6(%arg0: i32) -> (i32, i32) {
    %c0_i32 = arith.constant 0 : i32
    %c0_i32_0 = arith.constant 0 : i32
    %c0_i32_1 = arith.constant 0 : i32
    return %c0_i32, %c0_i32_0 : i32, i32
  }
  func.func @transform_7(%arg0: i32) -> (i32, i32) {
    %c0_i32 = arith.constant 0 : i32
    %c0_i32_0 = arith.constant 0 : i32
    return %arg0, %c0_i32 : i32, i32
  }
  func.func @transform_8(%arg0: i32) -> (i32, i32) {
    %c0_i32 = arith.constant 0 : i32
    %c0_i32_0 = arith.constant 0 : i32
    return %arg0, %c0_i32 : i32, i32
  }
}

</mosaic_0001>

<bundles_post_ra>
// kernel: policy_network_forward.1
= control target key start
LH: loop header
LB: loop body
LE: loop exit
PB: predicated region body
PF: predicated region fallthrough
CT: control target
= control target key end

     0   :  { %14 = vsyncpa [#allocation3], 0  ;;  %vm37_vm0 = vcmask 130048   ;;  %s313_s0 = inlined_call_operand.vmem [shape: f32[2,16], index: 0, kind: input, shape index: {}]   ;;  %s314_s1 = inlined_call_operand.vmem [shape: f32[16,32], index: 1, kind: input, shape index: {}]   ;;  %s315_s2 = inlined_call_operand.vmem [shape: f32[1,32], index: 2, kind: input, shape index: {}]   ;;  %s316_s3 = inlined_call_operand.vmem [shape: f32[32,4], index: 3, kind: input, shape index: {}]   ;;  %s317_s4 = inlined_call_operand.vmem [shape: f32[1,4], index: 4, kind: input, shape index: {}]   ;;  %s318_s5 = inlined_call_operand.vmem [shape: f32[32,3], index: 5, kind: input, shape index: {}]   ;;  %s319_s6 = inlined_call_operand.vmem [shape: f32[1,3], index: 6, kind: input, shape index: {}]   ;;  %s320_s7 = inlined_call_operand.hbm [shape: f32[2,4], index: 7, kind: output, shape index: {0}]   ;;  %s321_s8 = inlined_call_operand.hbm [shape: f32[2,3], index: 8, kind: output, shape index: {1}]  }
   0x1   :  { %v32_v0 = vld [vmem:[%s314_s1 + $0x8] sm:$0xff]  ;;  %v31_v1 = vld [vmem:[%s314_s1] sm:$0xff]  ;;  %v65_v3 = vld [vmem:[%s316_s3 + $0x18] sm:$0xff] }
   0x2   :  { %v30_v2 = vld [vmem:[%s313_s0] sm:$0x3]  ;;  %55 = vmatpush.msra.mxu0 %v32_v0  ;;  %v99_v4 = vld [vmem:[%s318_s5 + $0x18] sm:$0xff]  ;;  %86 = vmatpush.msra.mxu1 %v65_v3 }
   0x3   :  { %116 = vmatpush.msra.mxu2 %v99_v4 }
   0x4   :  { %56 = vmatpush.msra.mxu0 %v31_v1 }
   0x5   :  { %15 = vsyncpa [#allocation5], 0  ;;  %158 = vmatmul.msk.f32.vlgmr.msra.gmra.mxu0 %vm37_vm0, %v30_v2  ;;  %v64_v5 = vld [vmem:[%s316_s3 + $0x10] sm:$0xff]  ;;  %v63_v7 = vld [vmem:[%s316_s3 + $0x8] sm:$0xff]  ;;  %vm70_vm1 = vcmask 261120   ;;  %s133_s9 = sshll.u32 %s320_s7, 4  ;;  %s134_s9 = int_to_ptr.hbm [resolvable:$true] %s133_s9 }
   0x6   :  { %v98_v6 = vld [vmem:[%s318_s5 + $0x10] sm:$0xff]  ;;  %87 = vmatpush.msra.mxu1 %v64_v5  ;;  %v97_v8 = vld [vmem:[%s318_s5 + $0x8] sm:$0xff]  ;;  %v62_v9 = vld [vmem:[%s316_s3] sm:$0xff]  ;;  %s218_s3 = smov [#allocation2]   ;;  %vm94_vm2 = vcmask 25600   ;;  %s219_s11 = smov [#allocation4]  }
   0x7   :  { %117 = vmatpush.msra.mxu2 %v98_v6  ;;  %v96_v10 = vld [vmem:[%s318_s5] sm:$0xff]  ;;  %s131_s29 = sshll.u32 %s218_s3, 4  ;;  %s142_s12 = sshll.u32 %s219_s11, 4  ;;  %vm124_vm3 = vcmask 17408   ;;  %s132_s29 = int_to_ptr.vmem [resolvable:$true] %s131_s29  ;;  %s143_s12 = int_to_ptr.vmem [resolvable:$true] %s142_s12 }
   0x8   :  { %88 = vmatpush.msra.mxu1 %v63_v7  ;;  %v163_v11 = vld [vmem:[%s315_s2] ss:$0 sm:$0xff]  ;;  %s144_s14 = sshll.u32 %s321_s8, 4  ;;  %s145_s14 = int_to_ptr.hbm [resolvable:$true] %s144_s14 }
   0x9   :  { %118 = vmatpush.msra.mxu2 %v97_v8  ;;  %v164_v15 = vld [vmem:[%s317_s4] ss:$0 sm:$0xff] }
   0xa   :  { %89 = vmatpush.msra.mxu1 %v62_v9  ;;  %v165_v18 = vld [vmem:[%s319_s6] ss:$0 sm:$0xff] }
   0xb   :  { %119 = vmatpush.msra.mxu2 %v96_v10 }
  0x82   :  { %v58_v12 = vpop.f32.mrf.mxu0 }
  0x83   :  { %v59_v13 = vadd.f32 %v163_v11, %v58_v12 }
  0x85   :  { %v61_v14 = vmax.f32 %v59_v13, 0.0 }
  0x87   :  { %159 = vmatmul.msk.f32.vlgmr.msra.gmra.mxu1 %vm70_vm1, %v61_v14  ;;  %160 = vmatmul.msk.f32.vlgmr.msra.gmra.mxu2 %vm70_vm1, %v61_v14 }
 0x104   :  { %v91_v16 = vpop.f32.mrf.mxu1 }
 0x105   :  { %v92_v17 = vadd.f32 %v164_v15, %v91_v16 }
 0x107   :  { %95 = vst.msk [vmem:[#allocation2] sm:$0x3] %vm94_vm2, %v92_v17 }
 0x108   :  { %136 = dma.vmem_to_hbm [thread:$0]  %s132_s29, 32, %s134_s9, [#allocation3]  }
 0x10a   :  { %v121_v19 = vpop.f32.mrf.mxu2 }
 0x10b   :  { %v122_v20 = vadd.f32 %v165_v18, %v121_v19 }
 0x10d   :  { %125 = vst.msk [vmem:[#allocation4] sm:$0x3] %vm124_vm3, %v122_v20 }
 0x10e   :  { %147 = dma.vmem_to_hbm [thread:$0]  %s143_s12, 32, %s145_s14, [#allocation5]  }
 0x10f   :  { %214 = dma.done.wait [#allocation3], 32  }
 0x110   :  { %215 = vsyncadd [#allocation3], 4294967264 }
 0x111   :  { %216 = dma.done.wait [#allocation5], 32  }
 0x112   :  { %217 = vsyncadd [#allocation5], 4294967264 }
 0x113   :  { %156 = vsyncpa [#allocation3], 1 }
 0x114   :  { %157 = vsyncpa [#allocation5], 1 }

</bundles_post_ra>
